<compile_context>
chip_gen: v6e
topology: v6e:2x2x1
jax: 0.10.0
libtpu: 0.0.40
codegen_flags: <defaults>
</compile_context>

<pallas_src>
import math

import jax
import jax.numpy as jnp
from jax.experimental import pallas as pl
from jax.experimental.pallas import tpu as pltpu


def _round_up(x, m):
    return ((x + m - 1) // m) * m


def _cdiv(a, b):
    return (a + b - 1) // b


def _min_grid_steps():
    # v7x has 2 TensorCores/chip: guarantee >= 2 "parallel" grid steps so both
    # cores get work.  Single-TC chips (v5e/v6e) prefer one big tile.
    try:
        kind = jax.devices()[0].device_kind.lower()
    except Exception:
        return 1
    return 2 if ("v7" in kind or "7x" in kind) else 1


def _pick_tile_b(B, cap=1024):
    n_steps = _cdiv(B, cap)
    if B >= 16:
        n_steps = max(n_steps, _min_grid_steps())
    tile_b = _cdiv(B, n_steps)
    if tile_b >= B:
        return B                       # single full-extent block (always legal)
    tile_b = _round_up(tile_b, 8)      # sublane-aligned tiles; tail < 8 rows/step
    return min(tile_b, B)


def _model_kernel(x_ref, w_ref, wt_ref, b_ref, slope_ref, out_ref, hidden_ref):
    # x_ref:     (TB, F) VMEM batch tile (streamed)
    # w_ref:     (F, H)  full weight, grid-invariant
    # wt_ref:    (H, F)  pre-transposed weight, grid-invariant
    # b_ref:     (1, F)  bias row, grid-invariant
    # slope_ref: (1,)    f32 SMEM scalar (leaky-ReLU negative slope)
    x = x_ref[...]

    # hidden = einsum('...f,fh->...h', x, W): MXU with f32 accumulation.
    hidden = jnp.dot(x, w_ref[...], preferred_element_type=jnp.float32)

    # out = einsum('...h,fh->...f', hidden, W) = hidden @ W.T; W.T is supplied
    # pre-transposed, so the MXU is fed directly with no in-kernel transpose.
    out = jnp.dot(hidden.astype(wt_ref.dtype), wt_ref[...],
                  preferred_element_type=jnp.float32)
    out = out + b_ref[...].astype(jnp.float32)

    # leaky ReLU == relu(x) - slope*relu(-x) for finite x: one cmp+mul+select.
    slope = slope_ref[0]
    out = jnp.where(out >= 0, out, slope * out)

    out_ref[...] = out.astype(out_ref.dtype)
    hidden_ref[...] = hidden.astype(hidden_ref.dtype)


def model_forward(features, W, b_final, negative_slope, *, tile_b=None,
                  io_dtype=None):
    """features: (..., F), W: (F, H), b_final: (F,)
    -> (out (..., F), hidden (..., H)), matching the PyTorch Model.forward.

    io_dtype: optional streaming dtype (e.g. jnp.bfloat16) for the HBM-bound
    inputs/outputs; accumulation and the epilogue stay in float32.
    """
    *lead, F = features.shape
    F2, H = W.shape
    assert F == F2, "W must be (n_features, n_hidden)"
    B = int(math.prod(lead)) if lead else 1
    x = features.reshape(B, F)

    if io_dtype is not None:
        x = x.astype(io_dtype)
        W = W.astype(io_dtype)
        b_final = b_final.astype(io_dtype)
    out_dtype = x.dtype

    w_t = W.T                             # one-time tiny (H, F) copy
    b_row = b_final.reshape(1, F)
    slope = jnp.asarray([negative_slope], dtype=jnp.float32)

    if tile_b is None:
        tile_b = _pick_tile_b(B)
    else:
        tile_b = max(1, min(int(tile_b), B))
        if tile_b < B and tile_b % 8 != 0:
            tile_b = min(_round_up(tile_b, 8), B)
    n_steps = _cdiv(B, tile_b)

    itemsize = jnp.dtype(out_dtype).itemsize
    cost = pl.CostEstimate(
        flops=4 * B * F * H,                                   # two matmuls
        transcendentals=0,
        bytes_accessed=itemsize * (2 * B * F + B * H + 2 * F * H + F) + 4,
    )

    out, hidden = pl.pallas_call(
        _model_kernel,
        out_shape=(
            jax.ShapeDtypeStruct((B, F), out_dtype),
            jax.ShapeDtypeStruct((B, H), out_dtype),
        ),
        grid_spec=pltpu.PrefetchScalarGridSpec(
            num_scalar_prefetch=0,
            grid=(n_steps,),
            in_specs=[
                pl.BlockSpec((tile_b, F), lambda i: (i, 0)),    # x tile (streamed)
                pl.BlockSpec((F, H), lambda i: (0, 0)),         # W     (invariant)
                pl.BlockSpec((H, F), lambda i: (0, 0)),         # W.T   (invariant)
                pl.BlockSpec((1, F), lambda i: (0, 0)),         # bias  (invariant)
                pl.BlockSpec(memory_space=pltpu.MemorySpace.SMEM),  # slope scalar
            ],
            out_specs=[
                pl.BlockSpec((tile_b, F), lambda i: (i, 0)),
                pl.BlockSpec((tile_b, H), lambda i: (i, 0)),
            ],
        ),
        compiler_params=pltpu.CompilerParams(
            dimension_semantics=("parallel",),
            vmem_limit_bytes=32 * 1024 * 1024,
        ),
        cost_estimate=cost,
    )(x, W, w_t, b_row, slope)

    return out.reshape(*lead, F), hidden.reshape(*lead, H)


def reference_forward(features, W, b_final, negative_slope):
    hidden = jnp.einsum("...f,fh->...h", features, W)
    out = jnp.einsum("...h,fh->...f", hidden, W) + b_final
    out = jnp.maximum(out, 0.0) - negative_slope * jnp.maximum(-out, 0.0)
    return out, hidden


if __name__ == "__main__":
    # Small toy config consistent with the module: n_features > n_hidden.
    n_features = 32
    n_hidden = 8
    negative_slope = 0.05
    feature_probability = 0.3

    key = jax.random.PRNGKey(0)
    k_w, k_x, k_m, k_x2, k_x3, k_m3 = jax.random.split(key, 6)

    # Xavier (Glorot) normal init for W, matching nn.init.xavier_normal_.
    std = (2.0 / (n_features + n_hidden)) ** 0.5
    W = jax.random.normal(k_w, (n_features, n_hidden), dtype=jnp.float32) * std
    b_final = jnp.zeros((n_features,), dtype=jnp.float32)

    # Sparse features like generate_batch: uniform values masked by probability.
    feat = jax.random.uniform(k_x, (8, n_features), dtype=jnp.float32)
    mask = jax.random.uniform(k_m, (8, n_features)) <= feature_probability
    features = jnp.where(mask, feat, 0.0)

    out, hidden = model_forward(features, W, b_final, negative_slope)
    jax.block_until_ready((out, hidden))
    ref_out, ref_hidden = reference_forward(features, W, b_final, negative_slope)
    assert out.shape == (8, n_features) and hidden.shape == (8, n_hidden)
    assert jnp.allclose(out, ref_out, atol=1e-5, rtol=1e-5)
    assert jnp.allclose(hidden, ref_hidden, atol=1e-5, rtol=1e-5)

    # Batch NOT divisible by the tile: exercises the masked partial-block path
    # (no wrapper-side padding pass).
    feats2 = jax.random.uniform(k_x2, (13, n_features), dtype=jnp.float32)
    out2, hid2 = model_forward(feats2, W, b_final, negative_slope, tile_b=8)
    jax.block_until_ready((out2, hid2))
    ref_out2, ref_hid2 = reference_forward(feats2, W, b_final, negative_slope)
    assert out2.shape == (13, n_features) and hid2.shape == (13, n_hidden)
    assert jnp.allclose(out2, ref_out2, atol=1e-5, rtol=1e-5)
    assert jnp.allclose(hid2, ref_hid2, atol=1e-5, rtol=1e-5)

    # Larger batch with default (balanced / megacore-aware) tiling.
    feat3 = jax.random.uniform(k_x3, (300, n_features), dtype=jnp.float32)
    mask3 = jax.random.uniform(k_m3, (300, n_features)) <= feature_probability
    feats3 = jnp.where(mask3, feat3, 0.0)
    out3, hid3 = model_forward(feats3, W, b_final, negative_slope)
    jax.block_until_ready((out3, hid3))
    ref_out3, ref_hid3 = reference_forward(feats3, W, b_final, negative_slope)
    assert jnp.allclose(out3, ref_out3, atol=1e-5, rtol=1e-5)
    assert jnp.allclose(hid3, ref_hid3, atol=1e-5, rtol=1e-5)

    # bf16 streaming path (halves HBM bytes; f32 accumulation), loose tolerance.
    out_bf, hid_bf = model_forward(feats3, W, b_final, negative_slope,
                                   io_dtype=jnp.bfloat16)
    jax.block_until_ready((out_bf, hid_bf))
    assert jnp.allclose(out_bf.astype(jnp.float32), ref_out3, atol=5e-2, rtol=5e-2)
    assert jnp.allclose(hid_bf.astype(jnp.float32), ref_hid3, atol=5e-2, rtol=5e-2)

    print("KERNEL_OK")
</pallas_src>

<mosaic_0001>
module attributes {stable_mosaic.version = 11 : i64} {
  func.func @_model_kernel(%arg0: i32, %arg1: memref<8x32xf32, #tpu.memory_space<vmem>>, %arg2: memref<32x8xf32, #tpu.memory_space<vmem>>, %arg3: memref<8x32xf32, #tpu.memory_space<vmem>>, %arg4: memref<1x32xf32, #tpu.memory_space<vmem>>, %arg5: memref<1xf32, #tpu.memory_space<smem>>, %arg6: memref<8x32xf32, #tpu.memory_space<vmem>>, %arg7: memref<8x8xf32, #tpu.memory_space<vmem>>) attributes {dimension_semantics = [#tpu.dimension_semantics<parallel>], iteration_bounds = array<i64: 1>, scalar_prefetch = 0 : i64, scratch_operands = 0 : i64, tpu.core_type = #tpu.core_type<tc>, window_params = [{transform_indices = @transform_0, window_bounds = array<i64: 8, 32>}, {pipeline_mode = #tpu.pipeline_mode<synchronous>, transform_indices = @transform_1, window_bounds = array<i64: 32, 8>}, {pipeline_mode = #tpu.pipeline_mode<synchronous>, transform_indices = @transform_2, window_bounds = array<i64: 8, 32>}, {pipeline_mode = #tpu.pipeline_mode<synchronous>, transform_indices = @transform_3, window_bounds = array<i64: 1, 32>}, {transform_indices = @transform_4, window_bounds = array<i64: 1>}, {transform_indices = @transform_5, window_bounds = array<i64: 8, 32>}, {transform_indices = @transform_6, window_bounds = array<i64: 8, 8>}]} {
    %c0 = arith.constant 0 : index
    %c0_0 = arith.constant 0 : index
    %0 = vector.load %arg1[%c0, %c0_0] : memref<8x32xf32, #tpu.memory_space<vmem>>, vector<8x32xf32>
    %c0_1 = arith.constant 0 : index
    %c0_2 = arith.constant 0 : index
    %1 = vector.load %arg2[%c0_1, %c0_2] : memref<32x8xf32, #tpu.memory_space<vmem>>, vector<32x8xf32>
    %cst = arith.constant dense<0.000000e+00> : vector<8x8xf32>
    %2 = tpu.matmul %0, %1, %cst {dimension_numbers = #tpu.dot_dimension_numbers<[1], [0], [0], [1], [0, 0, 1, 1], [], []>} : vector<8x32xf32>, vector<32x8xf32>, vector<8x8xf32> -> vector<8x8xf32>
    %c0_3 = arith.constant 0 : index
    %c0_4 = arith.constant 0 : index
    %3 = vector.load %arg3[%c0_3, %c0_4] : memref<8x32xf32, #tpu.memory_space<vmem>>, vector<8x32xf32>
    %cst_5 = arith.constant dense<0.000000e+00> : vector<8x32xf32>
    %4 = tpu.matmul %2, %3, %cst_5 {dimension_numbers = #tpu.dot_dimension_numbers<[1], [0], [0], [1], [0, 0, 1, 1], [], []>} : vector<8x8xf32>, vector<8x32xf32>, vector<8x32xf32> -> vector<8x32xf32>
    %c0_6 = arith.constant 0 : index
    %c0_7 = arith.constant 0 : index
    %5 = vector.load %arg4[%c0_6, %c0_7] : memref<1x32xf32, #tpu.memory_space<vmem>>, vector<1x32xf32>
    %6 = vector.broadcast %5 : vector<1x32xf32> to vector<8x32xf32>
    %7 = arith.addf %4, %6 : vector<8x32xf32>
    %c0_8 = arith.constant 0 : index
    %8 = memref.load %arg5[%c0_8] : memref<1xf32, #tpu.memory_space<smem>>
    %cst_9 = arith.constant 0.000000e+00 : f32
    %9 = vector.broadcast %cst_9 : f32 to vector<8x32xf32>
    %10 = arith.cmpf oge, %7, %9 : vector<8x32xf32>
    %11 = vector.broadcast %8 : f32 to vector<8x32xf32>
    %12 = arith.mulf %11, %7 : vector<8x32xf32>
    %13 = arith.select %10, %7, %12 : vector<8x32xi1>, vector<8x32xf32>
    %c0_10 = arith.constant 0 : index
    %c0_11 = arith.constant 0 : index
    %14 = vector.load %arg6[%c0_10, %c0_11] : memref<8x32xf32, #tpu.memory_space<vmem>>, vector<8x32xf32>
    tpu.vector_store %arg6[%c0_10, %c0_11], %13 {strides = array<i32>} : memref<8x32xf32, #tpu.memory_space<vmem>>, vector<8x32xf32>,
    %c0_12 = arith.constant 0 : index
    %c0_13 = arith.constant 0 : index
    %15 = vector.load %arg7[%c0_12, %c0_13] : memref<8x8xf32, #tpu.memory_space<vmem>>, vector<8x8xf32>
    tpu.vector_store %arg7[%c0_12, %c0_13], %2 {strides = array<i32>} : memref<8x8xf32, #tpu.memory_space<vmem>>, vector<8x8xf32>,
    return
  }
  func.func @transform_0(%arg0: i32) -> (i32, i32) {
    %c0_i32 = arith.constant 0 : i32
    %c0_i32_0 = arith.constant 0 : i32
    return %arg0, %c0_i32 : i32, i32
  }
  func.func @transform_1(%arg0: i32) -> (i32, i32) {
    %c0_i32 = arith.constant 0 : i32
    %c0_i32_0 = arith.constant 0 : i32
    %c0_i32_1 = arith.constant 0 : i32
    return %c0_i32, %c0_i32_0 : i32, i32
  }
  func.func @transform_2(%arg0: i32) -> (i32, i32) {
    %c0_i32 = arith.constant 0 : i32
    %c0_i32_0 = arith.constant 0 : i32
    %c0_i32_1 = arith.constant 0 : i32
    return %c0_i32, %c0_i32_0 : i32, i32
  }
  func.func @transform_3(%arg0: i32) -> (i32, i32) {
    %c0_i32 = arith.constant 0 : i32
    %c0_i32_0 = arith.constant 0 : i32
    %c0_i32_1 = arith.constant 0 : i32
    return %c0_i32, %c0_i32_0 : i32, i32
  }
  func.func @transform_4(%arg0: i32) -> i32 {
    %c0_i32 = arith.constant 0 : i32
    %c0_i32_0 = arith.constant 0 : i32
    return %c0_i32 : i32
  }
  func.func @transform_5(%arg0: i32) -> (i32, i32) {
    %c0_i32 = arith.constant 0 : i32
    %c0_i32_0 = arith.constant 0 : i32
    return %arg0, %c0_i32 : i32, i32
  }
  func.func @transform_6(%arg0: i32) -> (i32, i32) {
    %c0_i32 = arith.constant 0 : i32
    %c0_i32_0 = arith.constant 0 : i32
    return %arg0, %c0_i32 : i32, i32
  }
}

</mosaic_0001>

<bundles_post_ra>
// kernel: tpu_custom_call.1
= control target key start
LH: loop header
LB: loop body
LE: loop exit
PB: predicated region body
PF: predicated region fallthrough
CT: control target
= control target key end

     0   :  { %13 = vsyncpa [#allocation4], 0  ;;  %v295_v1 = vmov 0.0   ;;  %vm296_vm0 = vmmov 0   ;;  %s366_s0 = inlined_call_operand.vmem [shape: f32[8,32], index: 0, kind: input, shape index: {}]   ;;  %s367_s1 = inlined_call_operand.vmem [shape: f32[32,8], index: 1, kind: input, shape index: {}]   ;;  %s368_s2 = inlined_call_operand.vmem [shape: f32[8,32], index: 2, kind: input, shape index: {}]   ;;  %s369_s3 = inlined_call_operand.vmem [shape: f32[1,32], index: 3, kind: input, shape index: {}]   ;;  %s370_s4 = inlined_call_operand.<no memory space> [shape: f32[1], index: 4, kind: input, shape index: {}]   ;;  %s371_s5 = inlined_call_operand.hbm [shape: f32[8,32], index: 5, kind: output, shape index: {0}]   ;;  %s372_s6 = inlined_call_operand.hbm [shape: f32[8,8], index: 6, kind: output, shape index: {1}]  }
   0x1   :  { %v29_v0 = vld [vmem:[%s367_s1 + $0x18] sm:$0xff]  ;;  %231 = vmatprep.subr.mxu0 %v295_v1  ;;  %v28_v2 = vld [vmem:[%s367_s1 + $0x10] sm:$0xff]  ;;  %239 = vmatprep.mubr.msk.f32.mxu0 %vm296_vm0, %v295_v1 }
   0x2   :  { %14 = vsyncpa [#allocation6], 0  ;;  %232 = vmatpush3.msra.mxu0 %v29_v0  ;;  %242 = vmatprep.subr.mxu1 %v295_v1  ;;  %v27_v3 = vld [vmem:[%s367_s1 + $0x8] sm:$0xff]  ;;  %v26_v4 = vld [vmem:[%s367_s1] sm:$0xff]  ;;  %vm30_vm1 = vcmask 261120   ;;  %vm112_vm2 = vcmask 64512  }
   0x3   :  { %233 = vmatprep.subr.mxu0 %v295_v1  ;;  %244 = vmatprep.mubr.msk.f32.mxu1 %vm296_vm0, %v295_v1  ;;  %v25_v5 = vld [vmem:[%s366_s0] sm:$0xff]  ;;  %s297_s1 = smov [#allocation5]  }
   0x4   :  { %234 = vmatpush3.msra.mxu0 %v28_v2  ;;  %v104_v6 = vld [vmem:[%s368_s2] sm:$0xff]  ;;  %s209_s9 = sshll.u32 %s297_s1, 4  ;;  %s210_s9 = int_to_ptr.vmem [resolvable:$true] %s209_s9 }
   0x5   :  { %235 = vmatprep.subr.mxu0 %v295_v1  ;;  %243 = vmatpush3.msra.mxu1 %v104_v6  ;;  %s251_s10 = scalar_lea.vmem %s210_s9, 128  ;;  %p256_p1 = scmp.lt.s32.totalorder %s210_s9, %s210_s9 }
   0x6   :  { %236 = vmatpush3.msra.mxu0 %v27_v3  ;;  %p252_p0 = scmp.ne.s32.totalorder %s210_s9, %s251_s10  ;;  %p257_p2 = scmp.lt.s32.totalorder %s251_s10, %s251_s10 }
   0x7   :  { %237 = vmatprep.subr.mxu0 %v295_v1 }
   0x8   :  { %238 = vmatpush3.msra.mxu0 %v26_v4  ;;  %p258_p3 = por %p257_p2, %p256_p1 }
   0x9   :  { %240 = vmatmul.mubr.msk.f32.vlgmr.msra.gmra.mxu0 %vm30_vm1, %v25_v5 }
   0xa   :  { %p259_p4 = pnand %p258_p3, %p252_p0 }
  0xc9   :  { %v100_v7 = vpop.f32.mrf.mxu0 }
  0xca   :  { %245 = vmatmul.mubr.msk.f32.vlgmr.msra.gmra.mxu1 %vm112_vm2, %v100_v7  ;;  %192 = vst.msk [vmem:[#allocation5] sm:$0xff] %vm112_vm2, %v100_v7 }
  0xcb   :  { %v241_v8 = vpop.f32.mrf.mxu0 }
  0xcc   :  { %262 = shalt.err (!%p259_p4)
}
  0xcd   :  { %212 = dma.vmem_to_hbm [thread:$0]  %s210_s9, 128, %s372_s6, [#allocation6]   ;;  %v222_v9 = vld [vmem:[%s369_s3] ss:$0 sm:$0xff]  ;;  %v188_v11 = vstv %s370_s4 }
  0xce   :  { %s298_s15 = smov [#allocation3]  }
  0xcf   :  { %s199_s16 = sshll.u32 %s298_s15, 4  ;;  %s200_s16 = int_to_ptr.vmem [resolvable:$true] %s199_s16 }
  0xd0   :  { %s271_s6 = scalar_lea.vmem %s200_s16, 128  ;;  %p276_p6 = scmp.lt.s32.totalorder %s200_s16, %s200_s16 }
  0xd1   :  { %p272_p5 = scmp.ne.s32.totalorder %s200_s16, %s271_s6  ;;  %p277_p7 = scmp.lt.s32.totalorder %s271_s6, %s271_s6 }
  0xd3   :  { %p278_p8 = por %p277_p7, %p276_p6 }
  0xd5   :  { %p279_p9 = pnand %p278_p8, %p272_p5 }
 0x18a   :  { %v182_v10 = vpop.f32.mrf.mxu1 }
 0x18b   :  { %v183_v12 = vadd.f32 %v222_v9, %v182_v10 }
 0x18c   :  { %v246_v13 = vpop.f32.mrf.mxu1 }
 0x18d   :  { %v189_v14 = vmul.f32 %v188_v11, %v183_v12  ;;  %vm187_vm3 = vcmp.ge.f32.partialorder %v183_v12, 0.0 }
 0x18f   :  { %v190_v15 = vsel %vm187_vm3, %v183_v12, %v189_v14 }
 0x190   :  { %191 = vst.msk [vmem:[#allocation3] sm:$0xff] %vm30_vm1, %v190_v15 }
 0x191   :  { %282 = shalt.err (!%p279_p9)
}
 0x192   :  { %202 = dma.vmem_to_hbm [thread:$0]  %s200_s16, 128, %s371_s5, [#allocation4]  }
 0x193   :  { %291 = dma.done.wait [#allocation4], 128  }
 0x194   :  { %292 = vsyncadd [#allocation4], 4294967168 }
 0x195   :  { %293 = dma.done.wait [#allocation6], 128  }
 0x196   :  { %294 = vsyncadd [#allocation6], 4294967168 }
 0x197   :  { %219 = vsyncpa [#allocation4], 1 }
 0x198   :  { %220 = vsyncpa [#allocation6], 1 }

</bundles_post_ra>
